<compile_context>
chip_gen: v6e
topology: v6e:2x2x1
jax: 0.10.0
libtpu: 0.0.40
codegen_flags: <defaults>
</compile_context>

<pallas_src>
import jax
import jax.numpy as jnp
from jax.experimental import pallas as pl
from jax.experimental.pallas import tpu as pltpu


def _actor_kernel(x_ref, w_ref, b_ref, o_ref):
    # x_ref: [TILE_P, 128] natural-layout slab of the flat obs buffer
    #        (each 128-lane row holds 128//F consecutive conv windows).
    # w_ref: [128, G] block-diagonal conv weight (group g's F lanes carry w).
    # b_ref: [1, 1] scalar bias in SMEM.
    # o_ref: [TILE_P, G] -- G conv outputs per input row.
    y = jnp.dot(x_ref[...], w_ref[...], preferred_element_type=jnp.float32)
    y = y + b_ref[0, 0]
    o_ref[...] = jnp.maximum(y, 0.0).astype(o_ref.dtype)


def actor_forward(obs, weight, bias, *, tile_p_max=4096):
    """obs: [B, 1, H, F] float32 (NCHW). weight: [1, 1, 1, F]. bias: [1].
    Returns logits [B, H] (== Conv2d(1, 1, [1, F]) -> ReLU -> Flatten)."""
    B, C, H, F = obs.shape
    assert C == 1, "Actor conv expects a single input channel"
    # TODO(synk): feature_dim that does not divide 128 needs a different layout.
    assert 128 % F == 0, "this kernel assumes feature_dim divides 128"
    G = 128 // F                      # conv windows per 128-lane row
    R = B * H                         # total conv windows (= logits)
    n = R * F                         # total input elements

    # Zero-copy view of the flat row-major buffer as [P, 128].  Padding only
    # happens when R % G != 0 (128-element alignment) or for tiny toy inputs
    # (< 8 rows); in the common large case there is no extra HBM copy.
    flat = obs.astype(jnp.float32).reshape(-1)
    P = max(pl.cdiv(n, 128), 8)
    if P * 128 != n:
        flat = jnp.pad(flat, (0, P * 128 - n))
    x2d = flat.reshape(P, 128)

    # Block-diagonal weight: w2[l, j] = w[l % F] if l // F == j else 0, so
    # (x2d @ w2)[p, j] = sum_f obs_window(p*G + j, f) * w[f].
    w_vec = weight.reshape(F).astype(jnp.float32)
    lane = jnp.arange(128)
    w2 = jnp.where(
        (lane[:, None] // F) == jnp.arange(G)[None, :],
        jnp.tile(w_vec, G)[:, None],
        0.0,
    ).astype(jnp.float32)             # [128, G]
    b = bias.reshape(1, 1).astype(jnp.float32)

    # Tile the row axis.  Input block = tile_p * 512 B (<= 2 MiB at the cap),
    # double-buffered well under every generation's scoped-VMEM default, and
    # the grid is kept at >= 4 steps so megacore can shard the parallel axis.
    target = max(8, min(tile_p_max, pl.cdiv(P, 4)))
    tile_p = min(-(-target // 8) * 8, (P // 8) * 8)
    grid = (pl.cdiv(P, tile_p),)      # ragged tail -> masked edge block

    out = pl.pallas_call(
        _actor_kernel,
        out_shape=jax.ShapeDtypeStruct((P, G), jnp.float32),
        grid=grid,
        in_specs=[
            pl.BlockSpec((tile_p, 128), lambda i: (i, 0)),         # pipelined input slabs
            pl.BlockSpec((128, G), lambda i: (0, 0)),              # weight, resident
            pl.BlockSpec(memory_space=pltpu.MemorySpace.SMEM),     # scalar bias
        ],
        out_specs=pl.BlockSpec((tile_p, G), lambda i: (i, 0)),
        compiler_params=pltpu.CompilerParams(
            dimension_semantics=("parallel",),                     # megacore on v7x
        ),
    )(x2d, w2, b)

    # Output row p, column j is conv window p*G + j -> row-major flatten is
    # already window order; slice off alignment padding and reshape (free).
    return out.reshape(-1)[:R].reshape(B, H)


if __name__ == "__main__":
    # Small shapes consistent with the module: feature_dim=16, H(action rows)=8, batch=2.
    B, H, F = 2, 8, 16

    key = jax.random.PRNGKey(0)
    k_obs, k_w, k_b = jax.random.split(key, 3)

    obs = jax.random.normal(k_obs, (B, 1, H, F), dtype=jnp.float32)
    # Conv2d(1, 1, kernel_size=[1, F]) parameter shapes.
    weight = jax.random.normal(k_w, (1, 1, 1, F), dtype=jnp.float32) * 0.1
    bias = jax.random.normal(k_b, (1,), dtype=jnp.float32) * 0.1

    def ref_fn(o):
        return jnp.maximum(
            jnp.einsum("bhf,f->bh", o[:, 0], weight.reshape(F),
                       precision=jax.lax.Precision.HIGHEST) + bias[0],
            0.0,
        )

    logits = actor_forward(obs, weight, bias)
    jax.block_until_ready(logits)
    assert logits.shape == (B, H)
    assert jnp.allclose(logits, ref_fn(obs), atol=1e-3, rtol=1e-3)

    # Ragged case: R = 900 is not a multiple of 128/F = 8 -> alignment pad and
    # an uneven grid (4 blocks of 32 rows over 113 rows, masked edge block).
    B2, H2 = 3, 300
    obs2 = jax.random.normal(jax.random.PRNGKey(1), (B2, 1, H2, F), dtype=jnp.float32)
    logits2 = actor_forward(obs2, weight, bias)
    jax.block_until_ready(logits2)
    assert logits2.shape == (B2, H2)
    assert jnp.allclose(logits2, ref_fn(obs2), atol=1e-3, rtol=1e-3)

    # Zero-copy multi-block path: R = 4096 -> P = 512 rows, grid of 4 full blocks.
    B3, H3 = 4, 1024
    obs3 = jax.random.normal(jax.random.PRNGKey(2), (B3, 1, H3, F), dtype=jnp.float32)
    logits3 = actor_forward(obs3, weight, bias)
    jax.block_until_ready(logits3)
    assert logits3.shape == (B3, H3)
    assert jnp.allclose(logits3, ref_fn(obs3), atol=1e-3, rtol=1e-3)

    print("KERNEL_OK")
</pallas_src>

<mosaic_0001>
module attributes {stable_mosaic.version = 11 : i64} {
  func.func @_actor_kernel(%arg0: i32, %arg1: memref<8x128xf32, #tpu.memory_space<vmem>>, %arg2: memref<128x8xf32, #tpu.memory_space<vmem>>, %arg3: memref<1x1xf32, #tpu.memory_space<smem>>, %arg4: memref<8x8xf32, #tpu.memory_space<vmem>>) attributes {dimension_semantics = [#tpu.dimension_semantics<parallel>], iteration_bounds = array<i64: 1>, scalar_prefetch = 0 : i64, scratch_operands = 0 : i64, tpu.core_type = #tpu.core_type<tc>, window_params = [{transform_indices = @transform_0, window_bounds = array<i64: 8, 128>}, {pipeline_mode = #tpu.pipeline_mode<synchronous>, transform_indices = @transform_1, window_bounds = array<i64: 128, 8>}, {transform_indices = @transform_2, window_bounds = array<i64: 1, 1>}, {transform_indices = @transform_3, window_bounds = array<i64: 8, 8>}]} {
    %c0 = arith.constant 0 : index
    %c0_0 = arith.constant 0 : index
    %0 = vector.load %arg1[%c0, %c0_0] : memref<8x128xf32, #tpu.memory_space<vmem>>, vector<8x128xf32>
    %c0_1 = arith.constant 0 : index
    %c0_2 = arith.constant 0 : index
    %1 = vector.load %arg2[%c0_1, %c0_2] : memref<128x8xf32, #tpu.memory_space<vmem>>, vector<128x8xf32>
    %cst = arith.constant dense<0.000000e+00> : vector<8x8xf32>
    %2 = tpu.matmul %0, %1, %cst {dimension_numbers = #tpu.dot_dimension_numbers<[1], [0], [0], [1], [0, 0, 1, 1], [], []>} : vector<8x128xf32>, vector<128x8xf32>, vector<8x8xf32> -> vector<8x8xf32>
    %c0_3 = arith.constant 0 : index
    %c0_4 = arith.constant 0 : index
    %3 = memref.load %arg3[%c0_3, %c0_4] : memref<1x1xf32, #tpu.memory_space<smem>>
    %4 = vector.broadcast %3 : f32 to vector<8x8xf32>
    %5 = arith.addf %2, %4 : vector<8x8xf32>
    %cst_5 = arith.constant 0.000000e+00 : f32
    %6 = vector.broadcast %cst_5 : f32 to vector<8x8xf32>
    %7 = arith.maximumf %5, %6 : vector<8x8xf32>
    %c0_6 = arith.constant 0 : index
    %c0_7 = arith.constant 0 : index
    %8 = vector.load %arg4[%c0_6, %c0_7] : memref<8x8xf32, #tpu.memory_space<vmem>>, vector<8x8xf32>
    tpu.vector_store %arg4[%c0_6, %c0_7], %7 {strides = array<i32>} : memref<8x8xf32, #tpu.memory_space<vmem>>, vector<8x8xf32>,
    return
  }
  func.func @transform_0(%arg0: i32) -> (i32, i32) {
    %c0_i32 = arith.constant 0 : i32
    %c0_i32_0 = arith.constant 0 : i32
    return %arg0, %c0_i32 : i32, i32
  }
  func.func @transform_1(%arg0: i32) -> (i32, i32) {
    %c0_i32 = arith.constant 0 : i32
    %c0_i32_0 = arith.constant 0 : i32
    %c0_i32_1 = arith.constant 0 : i32
    return %c0_i32, %c0_i32_0 : i32, i32
  }
  func.func @transform_2(%arg0: i32) -> (i32, i32) {
    %c0_i32 = arith.constant 0 : i32
    %c0_i32_0 = arith.constant 0 : i32
    %c0_i32_1 = arith.constant 0 : i32
    return %c0_i32, %c0_i32_0 : i32, i32
  }
  func.func @transform_3(%arg0: i32) -> (i32, i32) {
    %c0_i32 = arith.constant 0 : i32
    %c0_i32_0 = arith.constant 0 : i32
    return %arg0, %c0_i32 : i32, i32
  }
}

</mosaic_0001>

<bundles_post_ra>
// kernel: tpu_custom_call.1
= control target key start
LH: loop header
LB: loop body
LE: loop exit
PB: predicated region body
PF: predicated region fallthrough
CT: control target
= control target key end

     0   :  { %v199_v1 = vmov 0.0   ;;  %vm200_vm0 = vmmov 0   ;;  %s279_s0 = inlined_call_operand.vmem [shape: f32[8,128], index: 0, kind: input, shape index: {}]   ;;  %s280_s1 = inlined_call_operand.vmem [shape: f32[128,8], index: 1, kind: input, shape index: {}]   ;;  %s281_s2 = inlined_call_operand.<no memory space> [shape: f32[1,1], index: 2, kind: input, shape index: {}]   ;;  %s282_s3 = inlined_call_operand.hbm [shape: f32[8,8], index: 3, kind: output, shape index: {}]  }
   0x1   :  { %v32_v0 = vld [vmem:[%s280_s1 + $0x78] sm:$0xff]  ;;  %139 = vmatprep.subr.mxu0 %v199_v1  ;;  %v31_v2 = vld [vmem:[%s280_s1 + $0x70] sm:$0xff]  ;;  %171 = vmatprep.mubr.msk.f32.mxu0 %vm200_vm0, %v199_v1  ;;  %v30_v3 = vld [vmem:[%s280_s1 + $0x68] sm:$0xff] }
   0x2   :  { %140 = vmatpush3.msra.mxu0 %v32_v0  ;;  %v29_v4 = vld [vmem:[%s280_s1 + $0x60] sm:$0xff] }
   0x3   :  { %141 = vmatprep.subr.mxu0 %v199_v1 }
   0x4   :  { %142 = vmatpush3.msra.mxu0 %v31_v2 }
   0x5   :  { %143 = vmatprep.subr.mxu0 %v199_v1 }
   0x6   :  { %9 = vsyncpa [#allocation4], 0  ;;  %144 = vmatpush3.msra.mxu0 %v30_v3  ;;  %v28_v5 = vld [vmem:[%s280_s1 + $0x58] sm:$0xff]  ;;  %v27_v6 = vld [vmem:[%s280_s1 + $0x50] sm:$0xff]  ;;  %v34_v18 = vstv %s281_s2  ;;  %s201_s21 = smov [#allocation3]   ;;  %vm106_vm1 = vcmask 64512  }
   0x7   :  { %145 = vmatprep.subr.mxu0 %v199_v1  ;;  %v26_v7 = vld [vmem:[%s280_s1 + $0x48] sm:$0xff]  ;;  %v25_v8 = vld [vmem:[%s280_s1 + $0x40] sm:$0xff]  ;;  %v24_v9 = vld [vmem:[%s280_s1 + $0x38] sm:$0xff]  ;;  %s114_s22 = sshll.u32 %s201_s21, 4  ;;  %s115_s22 = int_to_ptr.vmem [resolvable:$true] %s114_s22 }
   0x8   :  { %146 = vmatpush3.msra.mxu0 %v29_v4  ;;  %v23_v10 = vld [vmem:[%s280_s1 + $0x30] sm:$0xff]  ;;  %v22_v11 = vld [vmem:[%s280_s1 + $0x28] sm:$0xff]  ;;  %v21_v12 = vld [vmem:[%s280_s1 + $0x20] sm:$0xff]  ;;  %p182_p1 = scmp.lt.s32.totalorder %s115_s22, %s115_s22 }
   0x9   :  { %147 = vmatprep.subr.mxu0 %v199_v1  ;;  %v20_v13 = vld [vmem:[%s280_s1 + $0x18] sm:$0xff]  ;;  %v19_v14 = vld [vmem:[%s280_s1 + $0x10] sm:$0xff]  ;;  %v18_v15 = vld [vmem:[%s280_s1 + $0x8] sm:$0xff] }
   0xa   :  { %148 = vmatpush3.msra.mxu0 %v28_v5  ;;  %v17_v16 = vld [vmem:[%s280_s1] sm:$0xff]  ;;  %s177_s1 = scalar_lea.vmem %s115_s22, 128 }
   0xb   :  { %149 = vmatprep.subr.mxu0 %v199_v1  ;;  %v16_v17 = vld [vmem:[%s279_s0] sm:$0xff]  ;;  %p178_p0 = scmp.ne.s32.totalorder %s115_s22, %s177_s1  ;;  %p183_p2 = scmp.lt.s32.totalorder %s177_s1, %s177_s1 }
   0xc   :  { %150 = vmatpush3.msra.mxu0 %v27_v6 }
   0xd   :  { %151 = vmatprep.subr.mxu0 %v199_v1  ;;  %p184_p3 = por %p183_p2, %p182_p1 }
   0xe   :  { %152 = vmatpush3.msra.mxu0 %v26_v7 }
   0xf   :  { %153 = vmatprep.subr.mxu0 %v199_v1  ;;  %p185_p4 = pnand %p184_p3, %p178_p0 }
  0x10   :  { %154 = vmatpush3.msra.mxu0 %v25_v8 }
  0x11   :  { %155 = vmatprep.subr.mxu0 %v199_v1 }
  0x12   :  { %156 = vmatpush3.msra.mxu0 %v24_v9 }
  0x13   :  { %157 = vmatprep.subr.mxu0 %v199_v1 }
  0x14   :  { %158 = vmatpush3.msra.mxu0 %v23_v10 }
  0x15   :  { %159 = vmatprep.subr.mxu0 %v199_v1 }
  0x16   :  { %160 = vmatpush3.msra.mxu0 %v22_v11 }
  0x17   :  { %161 = vmatprep.subr.mxu0 %v199_v1 }
  0x18   :  { %162 = vmatpush3.msra.mxu0 %v21_v12 }
  0x19   :  { %163 = vmatprep.subr.mxu0 %v199_v1 }
  0x1a   :  { %164 = vmatpush3.msra.mxu0 %v20_v13 }
  0x1b   :  { %165 = vmatprep.subr.mxu0 %v199_v1 }
  0x1c   :  { %166 = vmatpush3.msra.mxu0 %v19_v14 }
  0x1d   :  { %167 = vmatprep.subr.mxu0 %v199_v1 }
  0x1e   :  { %168 = vmatpush3.msra.mxu0 %v18_v15 }
  0x1f   :  { %169 = vmatprep.subr.mxu0 %v199_v1 }
  0x20   :  { %170 = vmatpush3.msra.mxu0 %v17_v16 }
  0x21   :  { %172 = vmatmul.mubr.f32.vlgmr.msra.gmra.mxu0 %v16_v17 }
  0xe1   :  { %v101_v19 = vpop.f32.mrf.mxu0 }
  0xe2   :  { %v102_v20 = vadd.f32 %v101_v19, %v34_v18 }
  0xe3   :  { %v173_v21 = vpop.f32.mrf.mxu0 }
  0xe4   :  { %v105_v22 = vmax.f32 %v102_v20, 0.0 }
  0xe6   :  { %107 = vst.msk [vmem:[#allocation3] sm:$0xff] %vm106_vm1, %v105_v22 }
  0xe7   :  { %188 = shalt.err (!%p185_p4)
}
  0xe8   :  { %117 = dma.vmem_to_hbm [thread:$0]  %s115_s22, 128, %s282_s3, [#allocation4]  }
  0xe9   :  { %197 = dma.done.wait [#allocation4], 128  }
  0xea   :  { %198 = vsyncadd [#allocation4], 4294967168 }
  0xeb   :  { %121 = vsyncpa [#allocation4], 1 }

</bundles_post_ra>
